<compile_context>
chip_gen: v7x
topology: tpu7x:2x2x1
jax: 0.10.0
libtpu: 0.0.40
codegen_flags: <defaults>
</compile_context>

<pallas_src>
import jax
import jax.numpy as jnp
from jax.experimental import pallas as pl
from jax.experimental.pallas import tpu as pltpu


def _round_up(x: int, m: int) -> int:
    return (x + m - 1) // m * m


def _sublane(dtype) -> int:
    # Sublane granularity scales with packing: f32 -> 8, bf16 -> 16, int8 -> 32.
    return max(8, 32 // jnp.dtype(dtype).itemsize)


def _vmem_capacity_bytes() -> int:
    try:
        return int(pltpu.get_tpu_info().vmem_capacity_bytes)
    except Exception:
        return 64 << 20  # conservative: v7x per-TC physical VMEM


# ---------------------------------------------------------------------------
# Kernels: one batched-matmul tile; K (grid axis 3) is the innermost reduction.
# ---------------------------------------------------------------------------
def _make_bmm_kernel_inplace(precision):
    """f32 output: accumulate straight into the resident output tile."""

    def kernel(a_ref, b_ref, o_ref):
        @pl.when(pl.program_id(3) == 0)
        def _init():
            o_ref[...] = jnp.zeros_like(o_ref)

        o_ref[...] += jnp.dot(
            a_ref[...], b_ref[...],
            preferred_element_type=jnp.float32, precision=precision,
        )

    return kernel


def _make_bmm_kernel_scratch(precision):
    """Narrow output dtypes: f32 VMEM accumulator, cast once at the last K step."""

    def kernel(a_ref, b_ref, o_ref, acc_ref):
        k = pl.program_id(3)

        @pl.when(k == 0)
        def _init():
            acc_ref[...] = jnp.zeros_like(acc_ref)

        acc_ref[...] += jnp.dot(
            a_ref[...], b_ref[...],
            preferred_element_type=jnp.float32, precision=precision,
        )

        @pl.when(k == pl.num_programs(3) - 1)
        def _finalize():
            o_ref[...] = acc_ref[...].astype(o_ref.dtype)

    return kernel


# ---------------------------------------------------------------------------
# Tile-size heuristic (roofline-style): balance pad waste, HBM re-reads and
# per-grid-step overhead inside the per-chip VMEM budget.
# ---------------------------------------------------------------------------
_CROSSOVER_FLOP_PER_BYTE = 600.0   # approx v6e/v7x bf16 compute/HBM crossover
_STEP_OVERHEAD_FLOPS = 3.0e8       # ~0.35 us of pipeline overhead per grid step


def _tile_candidates(dim, gran, prefs):
    """Return (tile, padded_dim) options for one dimension."""
    if dim < gran:
        return [(dim, dim)]          # full-dim block, no padding (allowed)
    aligned = _round_up(dim, gran)
    cands = []
    if aligned <= 2048:
        cands.append((aligned, aligned))     # full panel, zero extra pad
    for t in prefs:
        if t % gran == 0 and gran <= t < aligned:
            cands.append((t, _round_up(aligned, t)))
    if not cands:
        cands.append((aligned, aligned))
    return cands


def _select_tiles(B, M, N, K, in_isz, out_isz, gran_m, use_scratch, budget):
    m_cands = _tile_candidates(M, gran_m, (1024, 512, 256, 128))
    n_cands = _tile_candidates(N, 128, (1024, 512, 256, 128))
    k_cands = _tile_candidates(K, 128, (2048, 1024, 512, 256, 128))

    def vmem_need(tm, tn, tk):
        need = 2 * (tm * tk + tk * tn) * in_isz + 2 * tm * tn * out_isz
        if use_scratch:
            need += tm * tn * 4
        return need

    best = None
    for tm, Mp in m_cands:
        for tn, Np in n_cands:
            for tk, Kp in k_cands:
                if vmem_need(tm, tn, tk) + (4 << 20) > budget:
                    continue
                flops = 2.0 * B * Mp * Np * Kp
                hbm = (B * ((Mp * Kp) * (Np // tn) + (Kp * Np) * (Mp // tm)) * in_isz
                       + B * Mp * Np * out_isz)
                steps = B * (Mp // tm) * (Np // tn) * (Kp // tk)
                cost = max(flops, hbm * _CROSSOVER_FLOP_PER_BYTE) + steps * _STEP_OVERHEAD_FLOPS
                key = (cost, -tn, -(tm * tn * tk))   # tie-break: lane-dense, big tiles
                if best is None or key < best[0]:
                    best = (key, (tm, tn, tk, Mp, Np))

    if best is None:      # nothing fit (should not happen with >=16 MiB budget)
        tm, _ = m_cands[-1]
        tn, _ = n_cands[-1]
        tk, _ = k_cands[-1]
        return tm, tn, tk

    tm, tn, tk, Mp, Np = best[1]

    # v7x has 2 TensorCores sharding the parallel grid axes; avoid a degenerate
    # (1, 1, 1, K) grid by splitting a tile when alignment still holds.
    if B * (Mp // tm) * (Np // tn) == 1:
        if tm // 2 >= gran_m and (tm // 2) % gran_m == 0 and Mp % (tm // 2) == 0:
            tm //= 2
        elif tn // 2 >= 128 and (tn // 2) % 128 == 0 and Np % (tn // 2) == 0:
            tn //= 2

    return tm, tn, tk


# ---------------------------------------------------------------------------
# Public wrapper
# ---------------------------------------------------------------------------
def einsum_pallas(transformation: str, *operands, precision=None,
                  tm=None, tn=None, tk=None):
    """Pallas implementation of EinSum for the 'bmk,bkn->bmn' contraction.

    `precision` is forwarded to jnp.dot; pass jax.lax.Precision.HIGHEST for
    full-f32 MXU parity with the torch reference on large K.
    """
    if transformation.replace(" ", "") != "bmk,bkn->bmn":
        # TODO(synk): general einsum-string parsing/lowering not implemented;
        # only the batched-matmul contraction is supported here.
        raise NotImplementedError(f"unsupported einsum: {transformation}")

    a, b = operands
    B, M, K = a.shape
    Bb, Kb, N = b.shape
    assert B == Bb and K == Kb

    out_dtype = jnp.result_type(a.dtype, b.dtype)
    if jnp.issubdtype(out_dtype, jnp.integer) or out_dtype == jnp.bool_:
        # TODO(synk): torch integer einsum accumulates in the integer dtype
        # (wraparound semantics) and the v7x MXU has no integer modes; we
        # compute in f32 and cast back, which differs on overflow.
        compute_dtype = jnp.float32
    else:
        compute_dtype = out_dtype
    a = a.astype(compute_dtype)
    b = b.astype(compute_dtype)

    in_isz = jnp.dtype(compute_dtype).itemsize
    out_isz = jnp.dtype(out_dtype).itemsize
    use_scratch = out_dtype != jnp.float32           # f32 accumulates in-place
    gran_m = max(_sublane(compute_dtype), _sublane(out_dtype))

    phys_vmem = _vmem_capacity_bytes()
    budget = max(16 << 20, min(phys_vmem - (16 << 20), 100 << 20))

    if tm is None or tn is None or tk is None:
        a_tm, a_tn, a_tk = _select_tiles(
            B, M, N, K, in_isz, out_isz, gran_m, use_scratch, budget)
        tm = a_tm if tm is None else tm
        tn = a_tn if tn is None else tn
        tk = a_tk if tk is None else tk

    Mp, Np, Kp = _round_up(M, tm), _round_up(N, tn), _round_up(K, tk)

    # Zero-pad only ragged dims (zeros in K contribute nothing; padded M/N
    # rows/cols are sliced off below).  Aligned shapes skip the extra HBM pass.
    if (Mp, Kp) != (M, K):
        a = jnp.pad(a, ((0, 0), (0, Mp - M), (0, Kp - K)))
    if (Kp, Np) != (K, N):
        b = jnp.pad(b, ((0, 0), (0, Kp - K), (0, Np - N)))

    grid = (B, Mp // tm, Np // tn, Kp // tk)

    if use_scratch:
        kernel = _make_bmm_kernel_scratch(precision)
        scratch_shapes = [pltpu.VMEM((tm, tn), jnp.float32)]
    else:
        kernel = _make_bmm_kernel_inplace(precision)
        scratch_shapes = []

    need = 2 * (tm * tk + tk * tn) * in_isz + 2 * tm * tn * out_isz
    if use_scratch:
        need += tm * tn * 4
    vmem_limit = min(max(need + (4 << 20), 16 << 20), phys_vmem - (8 << 20))

    # Truthful tiled HBM traffic (A re-read per N-tile, B re-read per M-tile).
    bytes_accessed = (B * ((Mp * Kp) * (Np // tn) + (Kp * Np) * (Mp // tm)) * in_isz
                      + B * Mp * Np * out_isz)

    out = pl.pallas_call(
        kernel,
        out_shape=jax.ShapeDtypeStruct((B, Mp, Np), out_dtype),
        grid_spec=pltpu.PrefetchScalarGridSpec(
            num_scalar_prefetch=0,
            grid=grid,
            in_specs=[
                pl.BlockSpec((pl.Squeezed(), tm, tk),
                             lambda bi, i, j, k: (bi, i, k)),
                pl.BlockSpec((pl.Squeezed(), tk, tn),
                             lambda bi, i, j, k: (bi, k, j)),
            ],
            out_specs=pl.BlockSpec((pl.Squeezed(), tm, tn),
                                   lambda bi, i, j, k: (bi, i, j)),
            scratch_shapes=scratch_shapes,
        ),
        compiler_params=pltpu.CompilerParams(
            dimension_semantics=("parallel", "parallel", "parallel", "arbitrary"),
            vmem_limit_bytes=int(vmem_limit),
        ),
        cost_estimate=pl.CostEstimate(
            flops=2 * B * Mp * Np * Kp,
            bytes_accessed=int(bytes_accessed),
            transcendentals=0,
        ),
    )(a, b)

    if (Mp, Np) != (M, N):
        out = out[:, :M, :N]
    return out


if __name__ == "__main__":
    key = jax.random.PRNGKey(0)
    k1, k2 = jax.random.split(key)

    B, M, K, N = 2, 16, 32, 16
    a = jax.random.normal(k1, (B, M, K), dtype=jnp.float32)
    b = jax.random.normal(k2, (B, K, N), dtype=jnp.float32)

    out = einsum_pallas("bmk,bkn->bmn", a, b)
    out = jax.block_until_ready(out)

    # Correctness check against plain JAX einsum.
    ref = jnp.einsum("bmk,bkn->bmn", a, b)
    assert out.shape == (B, M, N)
    assert jnp.allclose(out, ref, atol=1e-4, rtol=1e-4)

    print("KERNEL_OK")
</pallas_src>

<mosaic_0001>
module attributes {stable_mosaic.version = 11 : i64} {
  func.func @kernel(%arg0: i32, %arg1: i32, %arg2: i32, %arg3: i32, %arg4: memref<1x16x32xf32, #tpu.memory_space<vmem>>, %arg5: memref<1x32x16xf32, #tpu.memory_space<vmem>>, %arg6: memref<1x16x16xf32, #tpu.memory_space<vmem>>) attributes {dimension_semantics = [#tpu.dimension_semantics<parallel>, #tpu.dimension_semantics<parallel>, #tpu.dimension_semantics<parallel>, #tpu.dimension_semantics<arbitrary>], iteration_bounds = array<i64: 2, 1, 1, 1>, scalar_prefetch = 0 : i64, scratch_operands = 0 : i64, tpu.core_type = #tpu.core_type<tc>, window_params = [{transform_indices = @transform_0, window_bounds = array<i64: 1, 16, 32>}, {transform_indices = @transform_1, window_bounds = array<i64: 1, 32, 16>}, {transform_indices = @transform_2, window_bounds = array<i64: 1, 16, 16>}]} {
    %c0_i32 = arith.constant 0 : i32
    %0 = arith.cmpi eq, %arg3, %c0_i32 : i32
    %1 = arith.extui %0 : i1 to i32
    %c0_i32_0 = arith.constant 0 : i32
    %2 = arith.cmpi ne, %1, %c0_i32_0 : i32
    scf.if %2 {
      %cst_12 = arith.constant 0.000000e+00 : f32
      %14 = vector.broadcast %cst_12 : f32 to vector<16x16xf32>
      %c0_13 = arith.constant 0 : index
      %c0_14 = arith.constant 0 : index
      %c0_15 = arith.constant 0 : index
      %15 = vector.load %arg6[%c0_13, %c0_14, %c0_15] : memref<1x16x16xf32, #tpu.memory_space<vmem>>, vector<1x16x16xf32>
      %16 = vector.shape_cast %15 : vector<1x16x16xf32> to vector<16x16xf32>
      %17 = vector.shape_cast %14 : vector<16x16xf32> to vector<1x16x16xf32>
      tpu.vector_store %arg6[%c0_13, %c0_14, %c0_15], %17 {strides = array<i32>} : memref<1x16x16xf32, #tpu.memory_space<vmem>>, vector<1x16x16xf32>,
    } else {
    }
    %c0 = arith.constant 0 : index
    %c0_1 = arith.constant 0 : index
    %c0_2 = arith.constant 0 : index
    %3 = vector.load %arg6[%c0, %c0_1, %c0_2] : memref<1x16x16xf32, #tpu.memory_space<vmem>>, vector<1x16x16xf32>
    %4 = vector.shape_cast %3 : vector<1x16x16xf32> to vector<16x16xf32>
    %c0_3 = arith.constant 0 : index
    %c0_4 = arith.constant 0 : index
    %c0_5 = arith.constant 0 : index
    %5 = vector.load %arg4[%c0_3, %c0_4, %c0_5] : memref<1x16x32xf32, #tpu.memory_space<vmem>>, vector<1x16x32xf32>
    %6 = vector.shape_cast %5 : vector<1x16x32xf32> to vector<16x32xf32>
    %c0_6 = arith.constant 0 : index
    %c0_7 = arith.constant 0 : index
    %c0_8 = arith.constant 0 : index
    %7 = vector.load %arg5[%c0_6, %c0_7, %c0_8] : memref<1x32x16xf32, #tpu.memory_space<vmem>>, vector<1x32x16xf32>
    %8 = vector.shape_cast %7 : vector<1x32x16xf32> to vector<32x16xf32>
    %cst = arith.constant dense<0.000000e+00> : vector<16x16xf32>
    %9 = tpu.matmul %6, %8, %cst {dimension_numbers = #tpu.dot_dimension_numbers<[1], [0], [0], [1], [0, 0, 1, 1], [], []>} : vector<16x32xf32>, vector<32x16xf32>, vector<16x16xf32> -> vector<16x16xf32>
    %10 = arith.addf %4, %9 : vector<16x16xf32>
    %c0_9 = arith.constant 0 : index
    %c0_10 = arith.constant 0 : index
    %c0_11 = arith.constant 0 : index
    %11 = vector.load %arg6[%c0_9, %c0_10, %c0_11] : memref<1x16x16xf32, #tpu.memory_space<vmem>>, vector<1x16x16xf32>
    %12 = vector.shape_cast %11 : vector<1x16x16xf32> to vector<16x16xf32>
    %13 = vector.shape_cast %10 : vector<16x16xf32> to vector<1x16x16xf32>
    tpu.vector_store %arg6[%c0_9, %c0_10, %c0_11], %13 {strides = array<i32>} : memref<1x16x16xf32, #tpu.memory_space<vmem>>, vector<1x16x16xf32>,
    return
  }
  func.func @transform_0(%arg0: i32, %arg1: i32, %arg2: i32, %arg3: i32) -> (i32, i32, i32) {
    %c0_i32 = arith.constant 0 : i32
    return %arg0, %arg1, %arg3 : i32, i32, i32
  }
  func.func @transform_1(%arg0: i32, %arg1: i32, %arg2: i32, %arg3: i32) -> (i32, i32, i32) {
    %c0_i32 = arith.constant 0 : i32
    return %arg0, %arg3, %arg2 : i32, i32, i32
  }
  func.func @transform_2(%arg0: i32, %arg1: i32, %arg2: i32, %arg3: i32) -> (i32, i32, i32) {
    %c0_i32 = arith.constant 0 : i32
    return %arg0, %arg1, %arg2 : i32, i32, i32
  }
}

</mosaic_0001>

<bundles_post_ra>
// kernel: tpu_custom_call.1
= control target key start
LH: loop header
LB: loop body
LE: loop exit
PB: predicated region body
PF: predicated region fallthrough
CT: control target
= control target key end

     0   :  { %7 = vsyncpa [#allocation3], 0  ;;  %s813_s0 = inlined_call_operand.vmem [shape: f32[2,16,32], index: 0, kind: input, shape index: {}]   ;;  %s814_s1 = inlined_call_operand.vmem [shape: f32[2,32,16], index: 1, kind: input, shape index: {}]   ;;  %s815_s2 = inlined_call_operand.hbm [shape: f32[2,16,16], index: 2, kind: output, shape index: {}]  }
   0x1   :  { %9 = vsyncpa [#allocation3 + $0x1], 0  ;;  %s678_s9 = smov 0   ;;  %s680_s10 = smov 0  }
   0x2   :  { %s682_s11 = smov 0   ;;  %s684_s12 = smov 0  }
   0x3   :  { %s686_s13 = smov 0   ;;  %s688_s14 = smov 0  }
   0x4 LB: > { %s476_s15 = sadd.s32 4294967295, %s657_s14   ;;  %s477_s16 = sadd.s32 4294967294, %s657_s14   ;;  %s657_s14 = sphi %s688_s14, %s15_s14   ;;  %s653_s13 = sphi %s686_s13, %s822_s13   ;;  %s649_s12 = sphi %s684_s12, %s821_s12   ;;  %s645_s11 = sphi %s682_s11, %s820_s11   ;;  %s641_s10 = sphi %s680_s10, %s819_s10   ;;  %s637_s9 = sphi %s678_s9, %s818_s9  }
   0x5   : > { %s41_s17 = sadd.s32 1, %s653_s13  ;;  %s112_s18 = sadd.s32 1, %s645_s11 }
   0x6   : > { %p43_p0 = scmp.ge.s32.totalorder %s41_s17, 2  ;;  %p122_p1 = scmp.ne.s32.totalorder %s645_s11, %s641_s10 }
   0x7   : > { %p123_p2 = scmp.eq.s32.totalorder %s476_s15, 1  ;;  %p128_p3 = scmp.ne.s32.totalorder %s641_s10, %s637_s9 }
   0x8   : > { %s824_s17 = smov (%p43_p0, %s41_s17), 0  ;;  %p129_p5 = scmp.eq.s32.totalorder %s477_s16, 1 }
   0x9   : > { %p718_p4 = por %p123_p2, %p122_p1  ;;  %s105_s20 = ssub.s32 %s653_s13, %s824_s17 }
   0xa   : > { %p480_p6 = scmp.ge.s32.totalorder %s657_s14, 1  ;;  %p110_p7 = scmp.eq.s32.totalorder %s105_s20, 0 }
   0xb   : > { %p725_p8 = por %p129_p5, %p128_p3  ;;  %p179_p9 = scmp.lt.s32.totalorder %s657_s14, 3 }
   0xc   : > { %s731_s22 = scalar_select %p110_p7, %s645_s11, %s112_s18  }
   0xd   : > { %p180_p10 = pnand %p480_p6, %p179_p9 }
   0xe   : > { %p221_p11 = scmp.lt.s32.totalorder (!%p180_p10), %s649_s12, 1  ;;  %s217_s23 = sand.u32 (!%p180_p10), 1, %s641_s10   ;;  %vm251_vm0 = vcmask (!%p180_p10), 130048   ;;  %v659_v0 = vmov (!%p180_p10), 0.0   ;;  %vm262_vm1 = vcmask (!%p180_p10), 261120  }
   0xf   : > { %183 = sbr.rel (%p180_p10) target bundleno = 267 (0x10b), region = 28  ;;  %s481_s24 = sshll.u32 (!%p180_p10), %s217_s23, 4 }
  0x10   : > { %s738_s28 = scalar_lea.vmem (!%p180_p10), [#allocation2], %s481_s24  ;;  %s495_s7 = sshll.u32 (!%p180_p10), %s649_s12, 8 }
  0x11   : > { %253 = vst.msk [vmem:[%s738_s28 + $0x8] sm:$0xff] (!%p180_p10), %vm251_vm0, %v659_v0  ;;  %252 = vst.msk [vmem:[%s738_s28] sm:$0xff] (!%p180_p10), %vm251_vm0, %v659_v0  ;;  %s366_s8 = sshll.u32 (!%p180_p10), %s738_s28, 4  ;;  %s757_s18 = scalar_lea.hbm (!%p180_p10), %s815_s2, %s495_s7  ;;  %s759_s8 = int_to_ptr.vmem [resolvable:$true] %s366_s8 }
  0x12   : > { %s579_s20 = scalar_lea.vmem (!%p180_p10), %s759_s8, 256  ;;  %s660_s24 = smov (!%p180_p10), [#allocation2]  }
  0x13   : > { %p580_p12 = scmp.ne.s32.totalorder (!%p180_p10), %s759_s8, %s579_s20 }
  0x15   : > { %p581_p13 = pnand (!%p180_p10), %p580_p12, %p718_p4 }
  0x16   : > { %s222_s25 = scalar_select %p221_p11, %s649_s12, 1 }
  0x17   : > { %s767_s12 = scalar_lea.sflag [#allocation3], %s217_s23  ;;  %p582_p0 = pneg %p581_p13 }
  0x18   : > { %s494_s26 = sshll.u32 %s222_s25, 5  ;;  %s493_s27 = sshll.u32 %s222_s25, 4  ;;  %v255_v9 = vld [vmem:[%s738_s28 + $0x8] sm:$0xff]  ;;  %v254_v10 = vld [vmem:[%s738_s28] sm:$0xff] }
  0x19   : > { %s244_s3 = scalar_lea.vmem %s814_s1, %s494_s26  ;;  %s231_s6 = scalar_lea.vmem %s813_s0, %s493_s27 }
  0x1a   : > { %v258_v1 = vld [vmem:[%s244_s3] sm:$0xff]  ;;  %v259_v2 = vld [vmem:[%s244_s3 + $0x8] sm:$0xff]  ;;  %v260_v3 = vld [vmem:[%s244_s3 + $0x10] sm:$0xff]  ;;  %s583_s25 = sshll.u32 %s660_s24, 4  ;;  %s584_s25 = int_to_ptr.vmem [resolvable:$false] %s583_s25 }
  0x1b   : > { %v513_v4 = vpack.c.bf16 %v259_v2, %v258_v1  ;;  %v261_v5 = vld [vmem:[%s244_s3 + $0x18] sm:$0xff]  ;;  %v256_v6 = vld [vmem:[%s231_s6] sm:$0xff]  ;;  %v257_v8 = vld [vmem:[%s231_s6 + $0x8] sm:$0xff]  ;;  %s585_s26 = scalar_lea.vmem %s584_s25, 512  ;;  %p586_p1 = scmp.lt.s32.totalorder %s759_s8, %s584_s25 }
  0x1c   : > { %v517_v7 = vpack.c.bf16 %v261_v5, %v260_v3  ;;  %510 = vmatprep.mubr.msk.f32.mxu0 %vm262_vm1, %v256_v6  ;;  %p587_p2 = scmp.lt.s32.totalorder %s585_s26, %s579_s20 }
  0x1d   : > { %514 = vmatprep.subr.bf16.mxu0 %v513_v4 }
  0x1e   : > { %516 = vmatpush3.bf16.msra.mxu0 %v513_v4  ;;  %p588_p3 = por %p587_p2, %p586_p1 }
  0x1f   : > { %518 = vmatprep.subr.bf16.mxu0 %v517_v7 }
  0x20   : > { %p589_p5 = pnand %p588_p3, %p582_p0 }
  0x22   : > { %520 = vmatpush3.bf16.msra.mxu0 %v517_v7 }
  0x25   : > { %511 = vmatmul.mubr.msk.f32.vlgmr.msra.gmra.mrb[0].mxu0 %vm262_vm1, %v257_v8 }
  0xf8   : > { %v512_v11 = vpop.f32.mrb[0].mxu0 }
  0xf9   : > { %v345_v12 = vadd.f32 %v512_v11, %v255_v9  ;;  %v335_v13 = vpop.f32.mrb[1].mxu0 }
  0xfa   : > { %v344_v14 = vadd.f32 %v335_v13, %v254_v10 }
  0xfb   : > { %348 = vst.msk [vmem:[%s738_s28 + $0x8] sm:$0xff] %vm251_vm0, %v345_v12 }
  0xfc   : > { %347 = vst.msk [vmem:[%s738_s28] sm:$0xff] %vm251_vm0, %v344_v14 }
  0xfd   : > { %592 = shalt.err (!%p589_p5)
}
  0xfe   : > { %s593_s23 = scalar_lea.hbm %s757_s18, 256  ;;  %s597_s29 = scalar_lea.hbm %s815_s2, 512 }
  0xff   : > { %p594_p6 = scmp.ne.s32.totalorder %s757_s18, %s593_s23  ;;  %p598_p10 = scmp.lt.u32.totalorder %s757_s18, %s815_s2 }
 0x100   : > { %p599_p11 = scmp.lt.u32.totalorder %s597_s29, %s593_s23  ;;  %p601_p13 = scmp.lt.u32.totalorder %s593_s23, %s757_s18 }
 0x101   : > { %p595_p7 = pnand %p594_p6, %p718_p4 }
 0x102   : > { %p600_p12 = por %p599_p11, %p598_p10 }
 0x103   : > { %p596_p9 = pneg %p595_p7 }
 0x104   : > { %p602_p0 = por %p601_p13, %p600_p12 }
 0x106   : > { %p603_p1 = pnand %p602_p0, %p596_p9 }
 0x108   : > { %606 = shalt.err (!%p603_p1)
}
 0x109   : > { %s661_s4 = smov 128   ;;  %s662_s5 = smov 8  }
 0x10a   : > { %521 = dma.vmem_to_hbm [thread:$0]  (%p718_p4), %s759_s8, 256, %s757_s18, %s767_s12, %s661_s4, %s661_s4, %s662_s5  }
 0x10b PF: > { %p527_p2 = scmp.ge.s32.totalorder %s657_s14, 2  ;;  %s381_s6 = sand.u32 1, %s637_s9  }
 0x10c   : > { %s382_s7 = scalar_lea.sflag [#allocation3], %s381_s6 }
 0x10d   : > { %p524_p3 = pnand %p527_p2, %p725_p8 }
 0x10f   : > { %632 = dma.done.wait (!%p524_p3), %s382_s7, 256  }
 0x110   : > { %634 = vsyncadd (!%p524_p3), %s382_s7, 4294967040  ;;  %s15_s14 = sadd.s32 1, %s657_s14   ;;  %s818_s9 = smov %s641_s10 }
 0x111   : > { %p12_p5 = scmp.ge.s32.totalorder %s15_s14, 4   ;;  %s819_s10 = smov %s645_s11 }
 0x112   : > { %s820_s11 = smov %s731_s22  ;;  %s821_s12 = smov %s653_s13 }
 0x113   : > { %s822_s13 = smov %s824_s17  ;;  %14 = sbr.rel (!%p12_p5) target bundleno = 4 (0x4), region = 70 }
 0x11a   :  { %387 = vsyncpa [#allocation3], 1 }
 0x11b   :  { %389 = vsyncpa [#allocation3 + $0x1], 1 }

</bundles_post_ra>
